<compile_context>
chip_gen: v5e
topology: v5e:2x2
jax: 0.10.0
libtpu: 0.0.40
codegen_flags: <defaults>
</compile_context>

<pallas_src>
import functools

import jax
import jax.numpy as jnp
from jax.experimental import pallas as pl
from jax.experimental.pallas import tpu as pltpu


def _round_up(x, m):
    return (x + m - 1) // m * m


def _dice_kernel(pred_ref, tgt_ref, loss_ref, num_acc, den_acc, *, smooth, p):
    # pred_ref / tgt_ref: (TILE_N, TILE_D) blocks in VMEM (native dtype)
    # loss_ref:           (TILE_N, 1) f32 per-row dice loss (resident over col axis)
    # num_acc / den_acc:  (TILE_N, 1) f32 VMEM scratch accumulators
    j = pl.program_id(1)

    @pl.when(j == 0)
    def _():
        num_acc[...] = jnp.zeros_like(num_acc)
        den_acc[...] = jnp.zeros_like(den_acc)

    pred = pred_ref[...].astype(jnp.float32)
    tgt = tgt_ref[...].astype(jnp.float32)

    num_acc[...] += jnp.sum(pred * tgt, axis=-1, keepdims=True)
    if p == 2:
        powed = pred * pred + tgt * tgt
    elif p == 1:
        powed = pred + tgt
    else:
        powed = jnp.power(pred, p) + jnp.power(tgt, p)
    den_acc[...] += jnp.sum(powed, axis=-1, keepdims=True)

    @pl.when(j == pl.num_programs(1) - 1)
    def _():
        num = 2.0 * num_acc[...] + jnp.float32(smooth)
        den = den_acc[...] + jnp.float32(smooth)
        loss_ref[...] = 1.0 - num / den


def binary_dice_loss(predict, target, smooth=1.0, p=2, reduction="mean",
                     tile_n=256, tile_d=1024):
    """predict, target: arrays of shape [N, *] (same shape). Returns dice loss."""
    assert predict.shape[0] == target.shape[0], "predict & target batch size don't match"
    n = predict.shape[0]
    pred2d = predict.reshape(n, -1)
    tgt2d = target.reshape(n, -1)
    d = pred2d.shape[1]

    # (8, 128)-aligned tiles; sized well under the 32 MiB scoped-VMEM default
    # (and v7x's 64 MiB physical VMEM) even with double-buffered inputs.
    tn = min(_round_up(tile_n, 8), _round_up(n, 8))
    td = min(_round_up(tile_d, 128), _round_up(d, 128))
    n_pad = _round_up(n, tn)
    d_pad = _round_up(d, td)

    if (n_pad, d_pad) != (n, d):
        # Zero padding is neutral for both row-wise sums.
        pred2d = jnp.pad(pred2d, ((0, n_pad - n), (0, d_pad - d)))
        tgt2d = jnp.pad(tgt2d, ((0, n_pad - n), (0, d_pad - d)))

    grid = (n_pad // tn, d_pad // td)

    bytes_in = (pred2d.size * pred2d.dtype.itemsize
                + tgt2d.size * tgt2d.dtype.itemsize)
    cost = pl.CostEstimate(
        flops=5 * n_pad * d_pad,          # mul, mul, mul, 2x reduce-add per element
        transcendentals=0,
        bytes_accessed=bytes_in + n_pad * 4,
    )

    kernel = functools.partial(_dice_kernel, smooth=float(smooth), p=p)
    per_row = pl.pallas_call(
        kernel,
        out_shape=jax.ShapeDtypeStruct((n_pad, 1), jnp.float32),
        grid_spec=pltpu.PrefetchScalarGridSpec(
            num_scalar_prefetch=0,
            grid=grid,
            in_specs=[
                pl.BlockSpec((tn, td), lambda i, j: (i, j)),
                pl.BlockSpec((tn, td), lambda i, j: (i, j)),
            ],
            out_specs=pl.BlockSpec((tn, 1), lambda i, j: (i, 0)),
            scratch_shapes=[
                pltpu.VMEM((tn, 1), jnp.float32),   # running sum(pred * tgt)
                pltpu.VMEM((tn, 1), jnp.float32),   # running sum(pred^p + tgt^p)
            ],
        ),
        compiler_params=pltpu.CompilerParams(
            dimension_semantics=("parallel", "arbitrary"),
            vmem_limit_bytes=32 * 1024 * 1024,
        ),
        cost_estimate=cost,
    )(pred2d, tgt2d)

    per_row = per_row[:n, 0]
    if reduction == "mean":
        return per_row.mean()
    elif reduction == "sum":
        return per_row.sum()
    elif reduction == "none":
        return per_row
    else:
        raise Exception("Unexpected reduction {}".format(reduction))


if __name__ == "__main__":
    key = jax.random.PRNGKey(0)
    k1, k2 = jax.random.split(key)

    N, C, H, W = 2, 4, 16, 16
    predict = jax.nn.sigmoid(jax.random.normal(k1, (N, C, H, W), dtype=jnp.float32))
    target = (jax.random.uniform(k2, (N, C, H, W)) > 0.5).astype(jnp.float32)

    def ref_loss(pred, tgt, smooth=1.0, p=2, reduction="mean"):
        pr = pred.reshape(pred.shape[0], -1).astype(jnp.float32)
        tg = tgt.reshape(tgt.shape[0], -1).astype(jnp.float32)
        num = jnp.sum(pr * tg, axis=1) * 2 + smooth
        den = jnp.sum(pr ** p + tg ** p, axis=1) + smooth
        loss = 1 - num / den
        if reduction == "mean":
            return loss.mean()
        if reduction == "sum":
            return loss.sum()
        return loss

    # 1) default tiling, 'mean' reduction (module default)
    loss = binary_dice_loss(predict, target)
    loss = jax.block_until_ready(loss)
    expected = ref_loss(predict, target)
    assert jnp.allclose(loss, expected, rtol=1e-5, atol=1e-6), (loss, expected)

    # 2) force a multi-tile grid along the feature axis (8 column tiles) to
    #    exercise the scratch-accumulator / pipelined reduction path, 'none' reduction
    loss_none = binary_dice_loss(predict, target, reduction="none",
                                 tile_n=8, tile_d=128)
    loss_none = jax.block_until_ready(loss_none)
    expected_none = ref_loss(predict, target, reduction="none")
    assert jnp.allclose(loss_none, expected_none, rtol=1e-5, atol=1e-6), (
        loss_none, expected_none)

    # 3) 'sum' reduction with another tiling
    loss_sum = binary_dice_loss(predict, target, reduction="sum",
                                tile_n=8, tile_d=256)
    loss_sum = jax.block_until_ready(loss_sum)
    expected_sum = ref_loss(predict, target, reduction="sum")
    assert jnp.allclose(loss_sum, expected_sum, rtol=1e-5, atol=1e-6), (
        loss_sum, expected_sum)

    print("KERNEL_OK")
</pallas_src>

<mosaic_0001>
module attributes {stable_mosaic.version = 11 : i64} {
  func.func @_dice_kernel(%arg0: i32, %arg1: i32, %arg2: memref<8x1024xf32, #tpu.memory_space<vmem>>, %arg3: memref<8x1024xf32, #tpu.memory_space<vmem>>, %arg4: memref<8x1xf32, #tpu.memory_space<vmem>>, %arg5: memref<8x1xf32, #tpu.memory_space<vmem>>, %arg6: memref<8x1xf32, #tpu.memory_space<vmem>>) attributes {dimension_semantics = [#tpu.dimension_semantics<parallel>, #tpu.dimension_semantics<arbitrary>], iteration_bounds = array<i64: 1, 1>, scalar_prefetch = 0 : i64, scratch_operands = 2 : i64, tpu.core_type = #tpu.core_type<tc>, window_params = [{transform_indices = @transform_0, window_bounds = array<i64: 8, 1024>}, {transform_indices = @transform_1, window_bounds = array<i64: 8, 1024>}, {transform_indices = @transform_2, window_bounds = array<i64: 8, 1>}]} {
    %c0_i32 = arith.constant 0 : i32
    %0 = arith.cmpi eq, %arg1, %c0_i32 : i32
    %1 = arith.extui %0 : i1 to i32
    %c0_i32_0 = arith.constant 0 : i32
    %2 = arith.cmpi ne, %1, %c0_i32_0 : i32
    scf.if %2 {
      %cst_15 = arith.constant 0.000000e+00 : f32
      %22 = vector.broadcast %cst_15 : f32 to vector<8x1xf32>
      %c0_16 = arith.constant 0 : index
      %c0_17 = arith.constant 0 : index
      %23 = vector.load %arg5[%c0_16, %c0_17] : memref<8x1xf32, #tpu.memory_space<vmem>>, vector<8x1xf32>
      tpu.vector_store %arg5[%c0_16, %c0_17], %22 {strides = array<i32>} : memref<8x1xf32, #tpu.memory_space<vmem>>, vector<8x1xf32>,
      %cst_18 = arith.constant 0.000000e+00 : f32
      %24 = vector.broadcast %cst_18 : f32 to vector<8x1xf32>
      %c0_19 = arith.constant 0 : index
      %c0_20 = arith.constant 0 : index
      %25 = vector.load %arg6[%c0_19, %c0_20] : memref<8x1xf32, #tpu.memory_space<vmem>>, vector<8x1xf32>
      tpu.vector_store %arg6[%c0_19, %c0_20], %24 {strides = array<i32>} : memref<8x1xf32, #tpu.memory_space<vmem>>, vector<8x1xf32>,
    } else {
    }
    %c0 = arith.constant 0 : index
    %c0_1 = arith.constant 0 : index
    %3 = vector.load %arg2[%c0, %c0_1] : memref<8x1024xf32, #tpu.memory_space<vmem>>, vector<8x1024xf32>
    %c0_2 = arith.constant 0 : index
    %c0_3 = arith.constant 0 : index
    %4 = vector.load %arg3[%c0_2, %c0_3] : memref<8x1024xf32, #tpu.memory_space<vmem>>, vector<8x1024xf32>
    %c0_4 = arith.constant 0 : index
    %c0_5 = arith.constant 0 : index
    %5 = vector.load %arg5[%c0_4, %c0_5] : memref<8x1xf32, #tpu.memory_space<vmem>>, vector<8x1xf32>
    %6 = arith.mulf %3, %4 : vector<8x1024xf32>
    %cst = arith.constant dense<0.000000e+00> : vector<8xf32>
    %7 = vector.multi_reduction <add>, %6, %cst [1] : vector<8x1024xf32> to vector<8xf32>
    %8 = vector.shape_cast %7 : vector<8xf32> to vector<8x1xf32>
    %9 = arith.addf %5, %8 : vector<8x1xf32>
    %c0_6 = arith.constant 0 : index
    %c0_7 = arith.constant 0 : index
    %10 = vector.load %arg5[%c0_6, %c0_7] : memref<8x1xf32, #tpu.memory_space<vmem>>, vector<8x1xf32>
    tpu.vector_store %arg5[%c0_6, %c0_7], %9 {strides = array<i32>} : memref<8x1xf32, #tpu.memory_space<vmem>>, vector<8x1xf32>,
    %11 = arith.mulf %3, %3 : vector<8x1024xf32>
    %12 = arith.mulf %4, %4 : vector<8x1024xf32>
    %13 = arith.addf %11, %12 : vector<8x1024xf32>
    %c0_8 = arith.constant 0 : index
    %c0_9 = arith.constant 0 : index
    %14 = vector.load %arg6[%c0_8, %c0_9] : memref<8x1xf32, #tpu.memory_space<vmem>>, vector<8x1xf32>
    %cst_10 = arith.constant dense<0.000000e+00> : vector<8xf32>
    %15 = vector.multi_reduction <add>, %13, %cst_10 [1] : vector<8x1024xf32> to vector<8xf32>
    %16 = vector.shape_cast %15 : vector<8xf32> to vector<8x1xf32>
    %17 = arith.addf %14, %16 : vector<8x1xf32>
    %c0_11 = arith.constant 0 : index
    %c0_12 = arith.constant 0 : index
    %18 = vector.load %arg6[%c0_11, %c0_12] : memref<8x1xf32, #tpu.memory_space<vmem>>, vector<8x1xf32>
    tpu.vector_store %arg6[%c0_11, %c0_12], %17 {strides = array<i32>} : memref<8x1xf32, #tpu.memory_space<vmem>>, vector<8x1xf32>,
    %c0_i32_13 = arith.constant 0 : i32
    %19 = arith.cmpi eq, %arg1, %c0_i32_13 : i32
    %20 = arith.extui %19 : i1 to i32
    %c0_i32_14 = arith.constant 0 : i32
    %21 = arith.cmpi ne, %20, %c0_i32_14 : i32
    scf.if %21 {
      %c0_15 = arith.constant 0 : index
      %c0_16 = arith.constant 0 : index
      %22 = vector.load %arg5[%c0_15, %c0_16] : memref<8x1xf32, #tpu.memory_space<vmem>>, vector<8x1xf32>
      %cst_17 = arith.constant 2.000000e+00 : f32
      %23 = vector.broadcast %cst_17 : f32 to vector<8x1xf32>
      %24 = arith.mulf %23, %22 : vector<8x1xf32>
      %cst_18 = arith.constant 1.000000e+00 : f32
      %25 = vector.broadcast %cst_18 : f32 to vector<8x1xf32>
      %26 = arith.addf %24, %25 : vector<8x1xf32>
      %c0_19 = arith.constant 0 : index
      %c0_20 = arith.constant 0 : index
      %27 = vector.load %arg6[%c0_19, %c0_20] : memref<8x1xf32, #tpu.memory_space<vmem>>, vector<8x1xf32>
      %cst_21 = arith.constant 1.000000e+00 : f32
      %28 = vector.broadcast %cst_21 : f32 to vector<8x1xf32>
      %29 = arith.addf %27, %28 : vector<8x1xf32>
      %30 = arith.divf %26, %29 : vector<8x1xf32>
      %cst_22 = arith.constant 1.000000e+00 : f32
      %31 = vector.broadcast %cst_22 : f32 to vector<8x1xf32>
      %32 = arith.subf %31, %30 : vector<8x1xf32>
      %c0_23 = arith.constant 0 : index
      %c0_24 = arith.constant 0 : index
      %33 = vector.load %arg4[%c0_23, %c0_24] : memref<8x1xf32, #tpu.memory_space<vmem>>, vector<8x1xf32>
      tpu.vector_store %arg4[%c0_23, %c0_24], %32 {strides = array<i32>} : memref<8x1xf32, #tpu.memory_space<vmem>>, vector<8x1xf32>,
    } else {
    }
    return
  }
  func.func @transform_0(%arg0: i32, %arg1: i32) -> (i32, i32) {
    %c0_i32 = arith.constant 0 : i32
    return %arg0, %arg1 : i32, i32
  }
  func.func @transform_1(%arg0: i32, %arg1: i32) -> (i32, i32) {
    %c0_i32 = arith.constant 0 : i32
    return %arg0, %arg1 : i32, i32
  }
  func.func @transform_2(%arg0: i32, %arg1: i32) -> (i32, i32) {
    %c0_i32 = arith.constant 0 : i32
    %c0_i32_0 = arith.constant 0 : i32
    return %arg0, %c0_i32 : i32, i32
  }
}

</mosaic_0001>

<bundles_post_ra>
// kernel: tpu_custom_call.1
= control target key start
LH: loop header
LB: loop body
LE: loop exit
PB: predicated region body
PF: predicated region fallthrough
CT: control target
= control target key end

     0   :  { %7 = vsyncpa [#allocation5], 0  ;;  %s239_s0 = inlined_call_operand.hbm [shape: f32[8,1024], index: 0, kind: input, shape index: {}]   ;;  %s240_s1 = inlined_call_operand.hbm [shape: f32[8,1024], index: 1, kind: input, shape index: {}]   ;;  %s241_s2 = inlined_call_operand.vmem [shape: f32[8,1], index: 2, kind: output, shape index: {}]  }
   0x1   :  { %s14_s11 = sshll.u32 %s239_s0, 4  ;;  %s15_s11 = int_to_ptr.hbm [resolvable:$true] %s14_s11 }
   0x2   :  { %8 = vsyncpa [#allocation7], 0  ;;  %s207_s12 = smov [#allocation4]   ;;  %s25_s16 = sshll.u32 %s240_s1, 4  ;;  %s26_s16 = int_to_ptr.hbm [resolvable:$true] %s25_s16 }
   0x3   :  { %s16_s13 = sshll.u32 %s207_s12, 4  ;;  %s208_s17 = smov [#allocation6]   ;;  %s17_s13 = int_to_ptr.vmem [resolvable:$true] %s16_s13 }
   0x4   :  { %19 = dma.hbm_to_vmem [thread:$0]  %s15_s11, 1024, %s17_s13, [#allocation5]  }
   0x5   :  { %s27_s18 = sshll.u32 %s208_s17, 4  ;;  %s28_s18 = int_to_ptr.vmem [resolvable:$true] %s27_s18 }
   0x6   :  { %30 = dma.hbm_to_vmem [thread:$0]  %s26_s16, 1024, %s28_s18, [#allocation7]  }
   0x7   :  { %203 = dma.done.wait [#allocation5], 1024  }
   0x8   :  { %204 = vsyncadd [#allocation5], 4294966272 }
   0x9   :  { %205 = dma.done.wait [#allocation7], 1024  }
   0xa   :  { %206 = vsyncadd [#allocation7], 4294966272  ;;  %vm43_vm0 = vcmask 7168   ;;  %v209_v0 = vmov 0.0   ;;  %v46_v1 = vld [vmem:[#allocation4] sm:$0xff]  ;;  %v47_v2 = vld [vmem:[#allocation4 + $0x8] sm:$0xff] }
   0xb   :  { %45 = vst.msk [vmem:[#allocation3] sm:$0xff] %vm43_vm0, %v209_v0  ;;  %v48_v3 = vld [vmem:[#allocation4 + $0x10] sm:$0xff]  ;;  %v49_v4 = vld [vmem:[#allocation4 + $0x18] sm:$0xff]  ;;  %v83_v5 = vmul.f32 %v46_v1, %v46_v1  ;;  %v50_v6 = vld [vmem:[#allocation4 + $0x20] sm:$0xff]  ;;  %v84_v8 = vmul.f32 %v47_v2, %v47_v2 }
   0xc   :  { %44 = vst.msk [vmem:[#allocation2] sm:$0xff] %vm43_vm0, %v209_v0  ;;  %v54_v7 = vld [vmem:[#allocation6] sm:$0xff]  ;;  %v85_v9 = vmul.f32 %v48_v3, %v48_v3  ;;  %v55_v10 = vld [vmem:[#allocation6 + $0x8] sm:$0xff]  ;;  %v56_v11 = vld [vmem:[#allocation6 + $0x10] sm:$0xff]  ;;  %v86_v15 = vmul.f32 %v49_v4, %v49_v4  ;;  %v87_v24 = vmul.f32 %v50_v6, %v50_v6 }
   0xd   :  { %v57_v12 = vld [vmem:[#allocation6 + $0x18] sm:$0xff]  ;;  %v91_v13 = vmul.f32 %v54_v7, %v54_v7  ;;  %v58_v14 = vld [vmem:[#allocation6 + $0x20] sm:$0xff]  ;;  %v92_v16 = vmul.f32 %v55_v10, %v55_v10  ;;  %v93_v17 = vmul.f32 %v56_v11, %v56_v11  ;;  %v51_v19 = vld [vmem:[#allocation4 + $0x28] sm:$0xff]  ;;  %v63_v22 = vmul.f32 %v54_v7, %v46_v1 }
   0xe   :  { %v94_v18 = vmul.f32 %v57_v12, %v57_v12  ;;  %v59_v20 = vld [vmem:[#allocation6 + $0x28] sm:$0xff]  ;;  %v64_v23 = vmul.f32 %v55_v10, %v47_v2  ;;  %v95_v25 = vmul.f32 %v58_v14, %v58_v14  ;;  %v52_v28 = vld [vmem:[#allocation4 + $0x30] sm:$0xff]  ;;  %v65_v30 = vmul.f32 %v56_v11, %v48_v3  ;;  %v53_v35 = vld [vmem:[#allocation4 + $0x38] sm:$0xff] }
   0xf   :  { %v99_v21 = vadd.f32 %v91_v13, %v83_v5  ;;  %v100_v26 = vadd.f32 %v92_v16, %v84_v8  ;;  %v101_v27 = vadd.f32 %v93_v17, %v85_v9  ;;  %v60_v29 = vld [vmem:[#allocation6 + $0x30] sm:$0xff]  ;;  %v88_v31 = vmul.f32 %v51_v19, %v51_v19  ;;  %v61_v36 = vld [vmem:[#allocation6 + $0x38] sm:$0xff] }
  0x10   :  { %v96_v32 = vmul.f32 %v59_v20, %v59_v20  ;;  %v102_v33 = vadd.f32 %v94_v18, %v86_v15  ;;  %v66_v37 = vmul.f32 %v57_v12, %v49_v4  ;;  %v71_v38 = vadd.f32 %v64_v23, %v63_v22 }
  0x11   :  { %v108_v34 = vadd.f32 %v100_v26, %v99_v21  ;;  %v89_v39 = vmul.f32 %v52_v28, %v52_v28  ;;  %v97_v40 = vmul.f32 %v60_v29, %v60_v29  ;;  %v103_v41 = vadd.f32 %v95_v25, %v87_v24 }
  0x12   :  { %v67_v43 = vmul.f32 %v58_v14, %v50_v6  ;;  %v72_v44 = vadd.f32 %v71_v38, %v65_v30  ;;  %v90_v45 = vmul.f32 %v53_v35, %v53_v35  ;;  %v98_v46 = vmul.f32 %v61_v36, %v61_v36  ;;  %v107_v63 = vld [vmem:[#allocation3] sm:$0xff] }
  0x13   :  { %v109_v42 = vadd.f32 %v108_v34, %v101_v27  ;;  %v104_v47 = vadd.f32 %v96_v32, %v88_v31  ;;  %v105_v50 = vadd.f32 %v97_v40, %v89_v39  ;;  %v68_v52 = vmul.f32 %v59_v20, %v51_v19  ;;  %v62_v2 = vld [vmem:[#allocation2] sm:$0xff] }
  0x14   :  { %v73_v49 = vadd.f32 %v72_v44, %v66_v37  ;;  %v106_v54 = vadd.f32 %v98_v46, %v90_v45  ;;  %v69_v57 = vmul.f32 %v60_v29, %v52_v28  ;;  %v70_v60 = vmul.f32 %v61_v36, %v53_v35 }
  0x15   :  { %v110_v48 = vadd.f32 %v109_v42, %v102_v33 }
  0x16   :  { %v74_v53 = vadd.f32 %v73_v49, %v67_v43 }
  0x17   :  { %v111_v51 = vadd.f32 %v110_v48, %v103_v41 }
  0x18   :  { %v75_v58 = vadd.f32 %v74_v53, %v68_v52 }
  0x19   :  { %v112_v55 = vadd.f32 %v111_v51, %v104_v47 }
  0x1a   :  { %v76_v61 = vadd.f32 %v75_v58, %v69_v57 }
  0x1b   :  { %v113_v56 = vadd.f32 %v112_v55, %v105_v50 }
  0x1c   :  { %v77_v62 = vadd.f32 %v76_v61, %v70_v60 }
  0x1d   :  { %v114_v59 = vadd.f32 %v113_v56, %v106_v54 }
  0x1f   :  { %115 = vadd.xlane.f32.xlu0 %v114_v59 }
  0x27   :  { %78 = vadd.xlane.f32.xlu0 %v77_v62 }
  0x92   :  { %v116_v0 = vpop.xlane.xlu0 %115 }
  0x93   :  { %v117_v1 = vadd.f32 %v116_v0, %v107_v63 }
  0x95   :  { %118 = vst.msk [vmem:[#allocation3] sm:$0xff] %vm43_vm0, %v117_v1 }
  0x9a   :  { %v79_v3 = vpop.xlane.xlu0 %78 }
  0x9b   :  { %v80_v4 = vadd.f32 %v79_v3, %v62_v2 }
  0x9c   :  { %v125_v5 = vld [vmem:[#allocation3] sm:$0xff] }
  0x9d   :  { %v126_v6 = vadd.f32 1.0, %v125_v5  ;;  %82 = vst.msk [vmem:[#allocation2] sm:$0xff] %vm43_vm0, %v80_v4 }
  0x9f   :  { %153 = vrcp.f32 %v126_v6  ;;  %v138_v12 = vand.u32 2147483648, %v126_v6  ;;  %v136_v14 = vand.u32 2147483647, %v126_v6  ;;  %vm132_vm2 = vweird.f32 %v126_v6 }
  0xa1   :  { %v139_v17 = vor.u32 1.1754944e-38, %v138_v12  ;;  %vm137_vm4 = vcmp.eq.f32.partialorder %v136_v14, 8.507059e+37 }
  0xa4   :  { %v122_v8 = vld [vmem:[#allocation2] sm:$0xff] }
  0xa5   :  { %v154_v7 = vpop.eup %153  ;;  %v123_v11 = vmul.f32 2.0, %v122_v8 }
  0xa6   :  { %v128_v9 = vmul.f32 %v154_v7, %v126_v6  ;;  %vm133_vm1 = vweird.f32 %v154_v7 }
  0xa7   :  { %v124_v15 = vadd.f32 1.0, %v123_v11  ;;  %vm134_vm3 = vmor %vm132_vm2, %vm133_vm1 }
  0xa8   :  { %v129_v10 = vsub.f32 1.0, %v128_v9 }
  0xaa   :  { %v130_v13 = vmul.f32 %v154_v7, %v129_v10 }
  0xac   :  { %v131_v16 = vadd.f32 %v154_v7, %v130_v13 }
  0xae   :  { %v135_v18 = vsel %vm134_vm3, %v154_v7, %v131_v16 }
  0xaf   :  { %v140_v19 = vsel %vm137_vm4, %v139_v17, %v135_v18 }
  0xb0   :  { %v141_v20 = vmul.f32 %v140_v19, %v124_v15 }
  0xb2   :  { %v142_v21 = vsub.f32 1.0, %v141_v20 }
  0xb4   :  { %143 = vst.msk [vmem:[%s241_s2] sm:$0xff] %vm43_vm0, %v142_v21 }
  0xb5   :  { %148 = vsyncpa [#allocation5], 1 }
  0xb6   :  { %149 = vsyncpa [#allocation7], 1 }

</bundles_post_ra>
